<compile_context>
chip_gen: v7x
topology: tpu7x:2x2x1
jax: 0.10.0
libtpu: 0.0.40
codegen_flags: <defaults>
</compile_context>

<pallas_src>
import functools

import jax
import jax.numpy as jnp
from jax import lax
from jax.experimental import pallas as pl
from jax.experimental.pallas import tpu as pltpu

# ----------------------------- hyperparameters ------------------------------
INPUT_DIM = 50        # vocab size
EMB_DIM = 16
HIDDEN_DIM = 32       # power of two (kernel uses a bit-mask for the fwd/bwd lane select)
OUTPUT_DIM = 8
N_LAYERS = 1
BIDIRECTIONAL = True
DROPOUT = 0.25        # identity at inference
PAD_IDX = 0

SEQ_LEN = 8
BATCH = 2

OUT_LANES = 128       # lane-dense FC output width; wrapper slices [:, :OUTPUT_DIM]

_VMEM = pl.BlockSpec(memory_space=pltpu.MemorySpace.VMEM)


def _ceil8(x):
    return (x + 7) // 8 * 8


# ------------------------------ fused kernel --------------------------------
def _fused_ner_kernel(seq_len, batch, hidden, vocab,
                      ids_ref, slab_a_ref, slab_b_ref, out_ref, hid_scr):
    """Whole NER_RNN forward in one kernel.

    ids_ref    : (S*B, 1)  int32 token ids (time-major, flattened)
    slab_a_ref : (row_whh + 2H, 8H) f32 packed slab:
                   rows [0:V]          T      = emb @ W_ih_cat^T   (gate-interleaved)
                   row  [row_b]        b_cat  = interleaved (b_ih + b_hh) both dirs
                   rows [row_whh:+2H]  W_hh_blk block-structured recurrence weight
    slab_b_ref : (2H + 8, 128) f32 packed slab:
                   rows [0:2H]  W_fc^T zero-padded to 128 lanes
                   row  [2H]    b_fc   zero-padded to 128 lanes
    out_ref    : (S*B, 128) lane-dense FC output (cols >= O are zero)
    hid_scr    : (S*B, 2H) VMEM scratch holding [fwd | bwd] hidden states
    """
    S, B, H, V = seq_len, batch, hidden, vocab
    SB = S * B
    G = 8 * H                      # fused gate width (both directions), 256

    row_b = _ceil8(V)              # bias row (8-aligned)
    row_whh = row_b + 8            # W_hh block start (8-aligned)

    # ---- embedding lookup + BOTH input projections as ONE lane-dense matmul ----
    ids = ids_ref[...]                                             # (SB, 1) int32
    vocab_iota = lax.broadcasted_iota(jnp.int32, (SB, V), 1)
    onehot = (vocab_iota == ids).astype(jnp.float32)               # (SB, V)
    T = slab_a_ref[0:V, :]                                         # (V, 8H)
    b_cat = slab_a_ref[row_b:row_b + 1, :]                         # (1, 8H)
    x_all = jnp.dot(onehot, T, preferred_element_type=jnp.float32) + b_cat  # (SB, 8H)
    # TODO(synk): nn.Dropout(p=0.25) is identity in eval mode; training-mode
    # RNG dropout is not applied here.

    whh = slab_a_ref[row_whh:row_whh + 2 * H, :]                   # (2H, 8H)

    # ---- hoisted gate-lane constants ----
    # gate column layout: [ i_f i_b | f_f f_b | g_f g_b | o_f o_b ], each block H wide
    lane = lax.broadcasted_iota(jnp.int32, (B, G), 1)
    is_g = (lane >= 4 * H) & (lane < 6 * H)          # cell-candidate lanes -> tanh
    fwd_sel = (lane & (2 * H - 1)) < H               # fwd-direction lanes (2H is pow2)
    # sigmoid(x) = 0.5 * tanh(0.5*x) + 0.5  -> one tanh covers all gate lanes
    gain = jnp.where(is_g, 1.0, 0.5).astype(jnp.float32)    # pre & post scale
    shift = jnp.where(is_g, 0.0, 0.5).astype(jnp.float32)   # post shift

    h = jnp.zeros((B, 2 * H), jnp.float32)           # [h_f | h_b]
    c = jnp.zeros((B, 2 * H), jnp.float32)           # [c_f | c_b]

    # Fully unrolled time loop (S is small & static).  Each step: ONE MXU matmul
    # for both directions + ONE tanh pass over all gates.
    for t in range(S):
        tb = S - 1 - t
        # fwd lanes take the time-t projection, bwd lanes take time S-1-t
        x_step = jnp.where(fwd_sel,
                           x_all[t * B:(t + 1) * B, :],
                           x_all[tb * B:(tb + 1) * B, :])          # (B, 8H)
        gates = x_step + jnp.dot(h, whh, preferred_element_type=jnp.float32)
        act = gain * jnp.tanh(gates * gain) + shift                # (B, 8H)
        i2 = act[:, 0 * H:2 * H]                                   # [i_f | i_b]
        f2 = act[:, 2 * H:4 * H]                                   # [f_f | f_b]
        g2 = act[:, 4 * H:6 * H]                                   # [g_f | g_b]
        o2 = act[:, 6 * H:8 * H]                                   # [o_f | o_b]
        c = f2 * c + i2 * g2
        h = o2 * jnp.tanh(c)
        hid_scr[t * B:(t + 1) * B, 0:H] = h[:, 0:H]                # fwd hidden @ t
        hid_scr[tb * B:(tb + 1) * B, H:2 * H] = h[:, H:2 * H]      # bwd hidden @ S-1-t

    # ---- fused final linear layer (lane-dense: 128 output lanes) ----
    wfc = slab_b_ref[0:2 * H, :]                                   # (2H, 128)
    bfc = slab_b_ref[2 * H:2 * H + 1, :]                           # (1, 128)
    out_ref[...] = (
        jnp.dot(hid_scr[...], wfc, preferred_element_type=jnp.float32) + bfc
    )


# ------------------------------- wrapper -------------------------------------
@jax.jit
def ner_rnn_forward(text, params):
    """Full NER_RNN forward (eval mode).  text: (S, B) int32 -> (S, B, O)."""
    S, B = text.shape
    H, E, V, O = HIDDEN_DIM, EMB_DIM, INPUT_DIM, OUTPUT_DIM
    G = 8 * H

    ids = text.reshape(S * B, 1).astype(jnp.int32)

    # --- parameter prep (tiny, runs under jit, fused by XLA) ---
    def interleave_gates(mf, mb):
        # PyTorch gate row order [i, f, g, o]; interleave directions per gate:
        # rows -> [i_f, i_b, f_f, f_b, g_f, g_b, o_f, o_b]
        blocks = []
        for k in range(4):
            blocks.append(mf[k * H:(k + 1) * H])
            blocks.append(mb[k * H:(k + 1) * H])
        return jnp.concatenate(blocks, axis=0)

    # fused embedding+input-projection table  T = emb @ W_ih_cat^T   (V, 8H)
    w_ih_cat = interleave_gates(params["w_ih_f"], params["w_ih_b"])       # (8H, E)
    T = params["emb"] @ w_ih_cat.T                                        # (V, 8H)
    b_cat = interleave_gates(
        (params["b_ih_f"] + params["b_hh_f"])[:, None],
        (params["b_ih_b"] + params["b_hh_b"])[:, None]).reshape(1, G)     # (1, 8H)

    # block-structured recurrence weight: [h_f | h_b] (2H) -> interleaved gates (8H)
    whh_blk = jnp.zeros((2 * H, G), jnp.float32)
    for k in range(4):
        whh_blk = whh_blk.at[0:H, k * 2 * H:k * 2 * H + H].set(
            params["w_hh_f"][k * H:(k + 1) * H, :].T)
        whh_blk = whh_blk.at[H:2 * H, k * 2 * H + H:(k + 1) * 2 * H].set(
            params["w_hh_b"][k * H:(k + 1) * H, :].T)

    # slab A: [ T | pad | b_cat | W_hh_blk ], all sections 8-row aligned
    row_b = _ceil8(V)
    row_whh = row_b + 8
    slab_a = jnp.zeros((row_whh + 2 * H, G), jnp.float32)
    slab_a = slab_a.at[0:V, :].set(T)
    slab_a = slab_a.at[row_b, :].set(b_cat[0])
    slab_a = slab_a.at[row_whh:row_whh + 2 * H, :].set(whh_blk)

    # slab B: lane-dense FC weight + bias, zero-padded to 128 output lanes
    slab_b = jnp.zeros((2 * H + 8, OUT_LANES), jnp.float32)
    slab_b = slab_b.at[0:2 * H, 0:O].set(params["w_fc"].T)
    slab_b = slab_b.at[2 * H, 0:O].set(params["b_fc"])

    kernel = functools.partial(_fused_ner_kernel, S, B, H, V)

    out_padded = pl.pallas_call(
        kernel,
        out_shape=jax.ShapeDtypeStruct((S * B, OUT_LANES), jnp.float32),
        in_specs=[_VMEM, _VMEM, _VMEM],
        out_specs=_VMEM,
        scratch_shapes=[pltpu.VMEM((S * B, 2 * H), jnp.float32)],
    )(ids, slab_a, slab_b)

    return out_padded[:, :O].reshape(S, B, O)


# --------------------------- pure-JAX reference ------------------------------
def _lstm_ref(x, w_ih, w_hh, b_ih, b_hh):
    S, B, _ = x.shape
    H = w_hh.shape[1]

    def step(carry, x_t):
        h, c = carry
        gates = x_t @ w_ih.T + h @ w_hh.T + b_ih + b_hh
        i = jax.nn.sigmoid(gates[:, :H])
        f = jax.nn.sigmoid(gates[:, H:2 * H])
        g = jnp.tanh(gates[:, 2 * H:3 * H])
        o = jax.nn.sigmoid(gates[:, 3 * H:])
        c = f * c + i * g
        h = o * jnp.tanh(c)
        return (h, c), h

    init = (jnp.zeros((B, H), jnp.float32), jnp.zeros((B, H), jnp.float32))
    _, ys = lax.scan(step, init, x)
    return ys


def ner_rnn_reference(text, params):
    embedded = jnp.take(params["emb"], text, axis=0)
    out_f = _lstm_ref(embedded, params["w_ih_f"], params["w_hh_f"],
                      params["b_ih_f"], params["b_hh_f"])
    out_b = _lstm_ref(embedded[::-1], params["w_ih_b"], params["w_hh_b"],
                      params["b_ih_b"], params["b_hh_b"])[::-1]
    outputs = jnp.concatenate([out_f, out_b], axis=-1)
    return outputs @ params["w_fc"].T + params["b_fc"]


# ------------------------------ param init -----------------------------------
def init_params(key):
    H, E, V, O = HIDDEN_DIM, EMB_DIM, INPUT_DIM, OUTPUT_DIM
    ks = jax.random.split(key, 12)
    k_lstm = 1.0 / jnp.sqrt(H)
    k_fc = 1.0 / jnp.sqrt(2 * H)

    emb = jax.random.normal(ks[0], (V, E), jnp.float32)
    emb = emb.at[PAD_IDX].set(0.0)                       # padding_idx row = 0

    def u(k, shape, bound):
        return jax.random.uniform(k, shape, jnp.float32, -bound, bound)

    return {
        "emb": emb,
        # forward direction
        "w_ih_f": u(ks[1], (4 * H, E), k_lstm),
        "w_hh_f": u(ks[2], (4 * H, H), k_lstm),
        "b_ih_f": u(ks[3], (4 * H,), k_lstm),
        "b_hh_f": u(ks[4], (4 * H,), k_lstm),
        # backward direction
        "w_ih_b": u(ks[5], (4 * H, E), k_lstm),
        "w_hh_b": u(ks[6], (4 * H, H), k_lstm),
        "b_ih_b": u(ks[7], (4 * H,), k_lstm),
        "b_hh_b": u(ks[8], (4 * H,), k_lstm),
        # final linear
        "w_fc": u(ks[9], (O, 2 * H), k_fc),
        "b_fc": u(ks[10], (O,), k_fc),
    }


# --------------------------------- main --------------------------------------
if __name__ == "__main__":
    root = jax.random.PRNGKey(0)
    k_params, k_text = jax.random.split(root)

    params = init_params(k_params)
    text = jax.random.randint(k_text, (SEQ_LEN, BATCH), 0, INPUT_DIM,
                              dtype=jnp.int32)
    # make sure some padding tokens exist
    text = text.at[-1, :].set(PAD_IDX)

    preds = jax.block_until_ready(ner_rnn_forward(text, params))
    ref = jax.block_until_ready(ner_rnn_reference(text, params))

    assert preds.shape == (SEQ_LEN, BATCH, OUTPUT_DIM)
    assert jnp.allclose(preds, ref, atol=1e-4, rtol=1e-4), (
        "Pallas output mismatch vs. JAX reference")

    print("KERNEL_OK")
</pallas_src>

<mosaic_0001>
module attributes {stable_mosaic.version = 11 : i64} {
  func.func @_fused_ner_kernel(%arg0: memref<16x1xi32, #tpu.memory_space<vmem>>, %arg1: memref<128x256xf32, #tpu.memory_space<vmem>>, %arg2: memref<72x128xf32, #tpu.memory_space<vmem>>, %arg3: memref<16x128xf32, #tpu.memory_space<vmem>>, %arg4: memref<16x64xf32, #tpu.memory_space<vmem>>) attributes {dimension_semantics = [], scalar_prefetch = 0 : i64, scratch_operands = 1 : i64, tpu.core_type = #tpu.core_type<tc>} {
    %c0 = arith.constant 0 : index
    %c0_0 = arith.constant 0 : index
    %0 = vector.load %arg0[%c0, %c0_0] : memref<16x1xi32, #tpu.memory_space<vmem>>, vector<16x1xi32>
    %1 = tpu.iota {dimensions = array<i32: 1>} : vector<16x50xi32>
    %2 = vector.broadcast %0 : vector<16x1xi32> to vector<16x50xi32>
    %3 = arith.cmpi eq, %1, %2 : vector<16x50xi32>
    %4 = arith.extui %3 : vector<16x50xi1> to vector<16x50xi32>
    %5 = arith.sitofp %4 : vector<16x50xi32> to vector<16x50xf32>
    %c0_1 = arith.constant 0 : index
    %c0_2 = arith.constant 0 : index
    %6 = vector.load %arg1[%c0_1, %c0_2] : memref<128x256xf32, #tpu.memory_space<vmem>>, vector<50x256xf32>
    %c56 = arith.constant 56 : index
    %c0_3 = arith.constant 0 : index
    %7 = vector.load %arg1[%c56, %c0_3] : memref<128x256xf32, #tpu.memory_space<vmem>>, vector<1x256xf32>
    %cst = arith.constant dense<0.000000e+00> : vector<16x256xf32>
    %8 = tpu.matmul %5, %6, %cst {dimension_numbers = #tpu.dot_dimension_numbers<[1], [0], [0], [1], [0, 0, 1, 1], [], []>} : vector<16x50xf32>, vector<50x256xf32>, vector<16x256xf32> -> vector<16x256xf32>
    %9 = vector.broadcast %7 : vector<1x256xf32> to vector<16x256xf32>
    %10 = arith.addf %8, %9 : vector<16x256xf32>
    %c64 = arith.constant 64 : index
    %c0_4 = arith.constant 0 : index
    %11 = vector.load %arg1[%c64, %c0_4] : memref<128x256xf32, #tpu.memory_space<vmem>>, vector<64x256xf32>
    %12 = tpu.iota {dimensions = array<i32: 1>} : vector<2x256xi32>
    %c128_i32 = arith.constant 128 : i32
    %13 = vector.broadcast %c128_i32 : i32 to vector<2x256xi32>
    %14 = arith.cmpi sge, %12, %13 : vector<2x256xi32>
    %c192_i32 = arith.constant 192 : i32
    %15 = vector.broadcast %c192_i32 : i32 to vector<2x256xi32>
    %16 = arith.cmpi slt, %12, %15 : vector<2x256xi32>
    %17 = arith.andi %14, %16 : vector<2x256xi1>
    %c63_i32 = arith.constant 63 : i32
    %18 = vector.broadcast %c63_i32 : i32 to vector<2x256xi32>
    %19 = arith.andi %12, %18 : vector<2x256xi32>
    %c32_i32 = arith.constant 32 : i32
    %20 = vector.broadcast %c32_i32 : i32 to vector<2x256xi32>
    %21 = arith.cmpi slt, %19, %20 : vector<2x256xi32>
    %cst_5 = arith.constant 1.000000e+00 : f32
    %cst_6 = arith.constant 5.000000e-01 : f32
    %22 = vector.broadcast %cst_5 : f32 to vector<2x256xf32>
    %23 = vector.broadcast %cst_6 : f32 to vector<2x256xf32>
    %24 = arith.select %17, %22, %23 : vector<2x256xi1>, vector<2x256xf32>
    %cst_7 = arith.constant 0.000000e+00 : f32
    %cst_8 = arith.constant 5.000000e-01 : f32
    %25 = vector.broadcast %cst_7 : f32 to vector<2x256xf32>
    %26 = vector.broadcast %cst_8 : f32 to vector<2x256xf32>
    %27 = arith.select %17, %25, %26 : vector<2x256xi1>, vector<2x256xf32>
    %cst_9 = arith.constant 0.000000e+00 : f32
    %28 = vector.broadcast %cst_9 : f32 to vector<2x64xf32>
    %cst_10 = arith.constant 0.000000e+00 : f32
    %29 = vector.broadcast %cst_10 : f32 to vector<2x64xf32>
    %30 = vector.extract_strided_slice %10 {offsets = [0, 0], sizes = [2, 256], strides = [1, 1]} : vector<16x256xf32> to vector<2x256xf32>
    %31 = vector.extract_strided_slice %10 {offsets = [14, 0], sizes = [2, 256], strides = [1, 1]} : vector<16x256xf32> to vector<2x256xf32>
    %32 = arith.select %21, %30, %31 : vector<2x256xi1>, vector<2x256xf32>
    %cst_11 = arith.constant dense<0.000000e+00> : vector<2x256xf32>
    %33 = tpu.matmul %28, %11, %cst_11 {dimension_numbers = #tpu.dot_dimension_numbers<[1], [0], [0], [1], [0, 0, 1, 1], [], []>} : vector<2x64xf32>, vector<64x256xf32>, vector<2x256xf32> -> vector<2x256xf32>
    %34 = arith.addf %32, %33 : vector<2x256xf32>
    %35 = arith.mulf %34, %24 : vector<2x256xf32>
    %36 = math.tanh %35 : vector<2x256xf32>
    %37 = arith.mulf %24, %36 : vector<2x256xf32>
    %38 = arith.addf %37, %27 : vector<2x256xf32>
    %39 = vector.extract_strided_slice %38 {offsets = [0, 0], sizes = [2, 64], strides = [1, 1]} : vector<2x256xf32> to vector<2x64xf32>
    %40 = vector.extract_strided_slice %38 {offsets = [0, 64], sizes = [2, 64], strides = [1, 1]} : vector<2x256xf32> to vector<2x64xf32>
    %41 = vector.extract_strided_slice %38 {offsets = [0, 128], sizes = [2, 64], strides = [1, 1]} : vector<2x256xf32> to vector<2x64xf32>
    %42 = vector.extract_strided_slice %38 {offsets = [0, 192], sizes = [2, 64], strides = [1, 1]} : vector<2x256xf32> to vector<2x64xf32>
    %43 = arith.mulf %40, %29 : vector<2x64xf32>
    %44 = arith.mulf %39, %41 : vector<2x64xf32>
    %45 = arith.addf %43, %44 : vector<2x64xf32>
    %46 = math.tanh %45 : vector<2x64xf32>
    %47 = arith.mulf %42, %46 : vector<2x64xf32>
    %48 = vector.extract_strided_slice %47 {offsets = [0, 0], sizes = [2, 32], strides = [1, 1]} : vector<2x64xf32> to vector<2x32xf32>
    %c0_12 = arith.constant 0 : index
    %c0_13 = arith.constant 0 : index
    %49 = vector.load %arg4[%c0_12, %c0_13] : memref<16x64xf32, #tpu.memory_space<vmem>>, vector<2x32xf32>
    tpu.vector_store %arg4[%c0_12, %c0_13], %48 {strides = array<i32>} : memref<16x64xf32, #tpu.memory_space<vmem>>, vector<2x32xf32>,
    %50 = vector.extract_strided_slice %47 {offsets = [0, 32], sizes = [2, 32], strides = [1, 1]} : vector<2x64xf32> to vector<2x32xf32>
    %c14 = arith.constant 14 : index
    %c32 = arith.constant 32 : index
    %51 = vector.load %arg4[%c14, %c32] : memref<16x64xf32, #tpu.memory_space<vmem>>, vector<2x32xf32>
    tpu.vector_store %arg4[%c14, %c32], %50 {strides = array<i32>} : memref<16x64xf32, #tpu.memory_space<vmem>>, vector<2x32xf32>,
    %52 = vector.extract_strided_slice %10 {offsets = [2, 0], sizes = [2, 256], strides = [1, 1]} : vector<16x256xf32> to vector<2x256xf32>
    %53 = vector.extract_strided_slice %10 {offsets = [12, 0], sizes = [2, 256], strides = [1, 1]} : vector<16x256xf32> to vector<2x256xf32>
    %54 = arith.select %21, %52, %53 : vector<2x256xi1>, vector<2x256xf32>
    %cst_14 = arith.constant dense<0.000000e+00> : vector<2x256xf32>
    %55 = tpu.matmul %47, %11, %cst_14 {dimension_numbers = #tpu.dot_dimension_numbers<[1], [0], [0], [1], [0, 0, 1, 1], [], []>} : vector<2x64xf32>, vector<64x256xf32>, vector<2x256xf32> -> vector<2x256xf32>
    %56 = arith.addf %54, %55 : vector<2x256xf32>
    %57 = arith.mulf %56, %24 : vector<2x256xf32>
    %58 = math.tanh %57 : vector<2x256xf32>
    %59 = arith.mulf %24, %58 : vector<2x256xf32>
    %60 = arith.addf %59, %27 : vector<2x256xf32>
    %61 = vector.extract_strided_slice %60 {offsets = [0, 0], sizes = [2, 64], strides = [1, 1]} : vector<2x256xf32> to vector<2x64xf32>
    %62 = vector.extract_strided_slice %60 {offsets = [0, 64], sizes = [2, 64], strides = [1, 1]} : vector<2x256xf32> to vector<2x64xf32>
    %63 = vector.extract_strided_slice %60 {offsets = [0, 128], sizes = [2, 64], strides = [1, 1]} : vector<2x256xf32> to vector<2x64xf32>
    %64 = vector.extract_strided_slice %60 {offsets = [0, 192], sizes = [2, 64], strides = [1, 1]} : vector<2x256xf32> to vector<2x64xf32>
    %65 = arith.mulf %62, %45 : vector<2x64xf32>
    %66 = arith.mulf %61, %63 : vector<2x64xf32>
    %67 = arith.addf %65, %66 : vector<2x64xf32>
    %68 = math.tanh %67 : vector<2x64xf32>
    %69 = arith.mulf %64, %68 : vector<2x64xf32>
    %70 = vector.extract_strided_slice %69 {offsets = [0, 0], sizes = [2, 32], strides = [1, 1]} : vector<2x64xf32> to vector<2x32xf32>
    %c2 = arith.constant 2 : index
    %c0_15 = arith.constant 0 : index
    %71 = vector.load %arg4[%c2, %c0_15] : memref<16x64xf32, #tpu.memory_space<vmem>>, vector<2x32xf32>
    tpu.vector_store %arg4[%c2, %c0_15], %70 {strides = array<i32>} : memref<16x64xf32, #tpu.memory_space<vmem>>, vector<2x32xf32>,
    %72 = vector.extract_strided_slice %69 {offsets = [0, 32], sizes = [2, 32], strides = [1, 1]} : vector<2x64xf32> to vector<2x32xf32>
    %c12 = arith.constant 12 : index
    %c32_16 = arith.constant 32 : index
    %73 = vector.load %arg4[%c12, %c32_16] : memref<16x64xf32, #tpu.memory_space<vmem>>, vector<2x32xf32>
    tpu.vector_store %arg4[%c12, %c32_16], %72 {strides = array<i32>} : memref<16x64xf32, #tpu.memory_space<vmem>>, vector<2x32xf32>,
    %74 = vector.extract_strided_slice %10 {offsets = [4, 0], sizes = [2, 256], strides = [1, 1]} : vector<16x256xf32> to vector<2x256xf32>
    %75 = vector.extract_strided_slice %10 {offsets = [10, 0], sizes = [2, 256], strides = [1, 1]} : vector<16x256xf32> to vector<2x256xf32>
    %76 = arith.select %21, %74, %75 : vector<2x256xi1>, vector<2x256xf32>
    %cst_17 = arith.constant dense<0.000000e+00> : vector<2x256xf32>
    %77 = tpu.matmul %69, %11, %cst_17 {dimension_numbers = #tpu.dot_dimension_numbers<[1], [0], [0], [1], [0, 0, 1, 1], [], []>} : vector<2x64xf32>, vector<64x256xf32>, vector<2x256xf32> -> vector<2x256xf32>
    %78 = arith.addf %76, %77 : vector<2x256xf32>
    %79 = arith.mulf %78, %24 : vector<2x256xf32>
    %80 = math.tanh %79 : vector<2x256xf32>
    %81 = arith.mulf %24, %80 : vector<2x256xf32>
    %82 = arith.addf %81, %27 : vector<2x256xf32>
    %83 = vector.extract_strided_slice %82 {offsets = [0, 0], sizes = [2, 64], strides = [1, 1]} : vector<2x256xf32> to vector<2x64xf32>
    %84 = vector.extract_strided_slice %82 {offsets = [0, 64], sizes = [2, 64], strides = [1, 1]} : vector<2x256xf32> to vector<2x64xf32>
    %85 = vector.extract_strided_slice %82 {offsets = [0, 128], sizes = [2, 64], strides = [1, 1]} : vector<2x256xf32> to vector<2x64xf32>
    %86 = vector.extract_strided_slice %82 {offsets = [0, 192], sizes = [2, 64], strides = [1, 1]} : vector<2x256xf32> to vector<2x64xf32>
    %87 = arith.mulf %84, %67 : vector<2x64xf32>
    %88 = arith.mulf %83, %85 : vector<2x64xf32>
    %89 = arith.addf %87, %88 : vector<2x64xf32>
    %90 = math.tanh %89 : vector<2x64xf32>
    %91 = arith.mulf %86, %90 : vector<2x64xf32>
    %92 = vector.extract_strided_slice %91 {offsets = [0, 0], sizes = [2, 32], strides = [1, 1]} : vector<2x64xf32> to vector<2x32xf32>
    %c4 = arith.constant 4 : index
    %c0_18 = arith.constant 0 : index
    %93 = vector.load %arg4[%c4, %c0_18] : memref<16x64xf32, #tpu.memory_space<vmem>>, vector<2x32xf32>
    tpu.vector_store %arg4[%c4, %c0_18], %92 {strides = array<i32>} : memref<16x64xf32, #tpu.memory_space<vmem>>, vector<2x32xf32>,
    %94 = vector.extract_strided_slice %91 {offsets = [0, 32], sizes = [2, 32], strides = [1, 1]} : vector<2x64xf32> to vector<2x32xf32>
    %c10 = arith.constant 10 : index
    %c32_19 = arith.constant 32 : index
    %95 = vector.load %arg4[%c10, %c32_19] : memref<16x64xf32, #tpu.memory_space<vmem>>, vector<2x32xf32>
    tpu.vector_store %arg4[%c10, %c32_19], %94 {strides = array<i32>} : memref<16x64xf32, #tpu.memory_space<vmem>>, vector<2x32xf32>,
    %96 = vector.extract_strided_slice %10 {offsets = [6, 0], sizes = [2, 256], strides = [1, 1]} : vector<16x256xf32> to vector<2x256xf32>
    %97 = vector.extract_strided_slice %10 {offsets = [8, 0], sizes = [2, 256], strides = [1, 1]} : vector<16x256xf32> to vector<2x256xf32>
    %98 = arith.select %21, %96, %97 : vector<2x256xi1>, vector<2x256xf32>
    %cst_20 = arith.constant dense<0.000000e+00> : vector<2x256xf32>
    %99 = tpu.matmul %91, %11, %cst_20 {dimension_numbers = #tpu.dot_dimension_numbers<[1], [0], [0], [1], [0, 0, 1, 1], [], []>} : vector<2x64xf32>, vector<64x256xf32>, vector<2x256xf32> -> vector<2x256xf32>
    %100 = arith.addf %98, %99 : vector<2x256xf32>
    %101 = arith.mulf %100, %24 : vector<2x256xf32>
    %102 = math.tanh %101 : vector<2x256xf32>
    %103 = arith.mulf %24, %102 : vector<2x256xf32>
    %104 = arith.addf %103, %27 : vector<2x256xf32>
    %105 = vector.extract_strided_slice %104 {offsets = [0, 0], sizes = [2, 64], strides = [1, 1]} : vector<2x256xf32> to vector<2x64xf32>
    %106 = vector.extract_strided_slice %104 {offsets = [0, 64], sizes = [2, 64], strides = [1, 1]} : vector<2x256xf32> to vector<2x64xf32>
    %107 = vector.extract_strided_slice %104 {offsets = [0, 128], sizes = [2, 64], strides = [1, 1]} : vector<2x256xf32> to vector<2x64xf32>
    %108 = vector.extract_strided_slice %104 {offsets = [0, 192], sizes = [2, 64], strides = [1, 1]} : vector<2x256xf32> to vector<2x64xf32>
    %109 = arith.mulf %106, %89 : vector<2x64xf32>
    %110 = arith.mulf %105, %107 : vector<2x64xf32>
    %111 = arith.addf %109, %110 : vector<2x64xf32>
    %112 = math.tanh %111 : vector<2x64xf32>
    %113 = arith.mulf %108, %112 : vector<2x64xf32>
    %114 = vector.extract_strided_slice %113 {offsets = [0, 0], sizes = [2, 32], strides = [1, 1]} : vector<2x64xf32> to vector<2x32xf32>
    %c6 = arith.constant 6 : index
    %c0_21 = arith.constant 0 : index
    %115 = vector.load %arg4[%c6, %c0_21] : memref<16x64xf32, #tpu.memory_space<vmem>>, vector<2x32xf32>
    tpu.vector_store %arg4[%c6, %c0_21], %114 {strides = array<i32>} : memref<16x64xf32, #tpu.memory_space<vmem>>, vector<2x32xf32>,
    %116 = vector.extract_strided_slice %113 {offsets = [0, 32], sizes = [2, 32], strides = [1, 1]} : vector<2x64xf32> to vector<2x32xf32>
    %c8 = arith.constant 8 : index
    %c32_22 = arith.constant 32 : index
    %117 = vector.load %arg4[%c8, %c32_22] : memref<16x64xf32, #tpu.memory_space<vmem>>, vector<2x32xf32>
    tpu.vector_store %arg4[%c8, %c32_22], %116 {strides = array<i32>} : memref<16x64xf32, #tpu.memory_space<vmem>>, vector<2x32xf32>,
    %118 = vector.extract_strided_slice %10 {offsets = [8, 0], sizes = [2, 256], strides = [1, 1]} : vector<16x256xf32> to vector<2x256xf32>
    %119 = vector.extract_strided_slice %10 {offsets = [6, 0], sizes = [2, 256], strides = [1, 1]} : vector<16x256xf32> to vector<2x256xf32>
    %120 = arith.select %21, %118, %119 : vector<2x256xi1>, vector<2x256xf32>
    %cst_23 = arith.constant dense<0.000000e+00> : vector<2x256xf32>
    %121 = tpu.matmul %113, %11, %cst_23 {dimension_numbers = #tpu.dot_dimension_numbers<[1], [0], [0], [1], [0, 0, 1, 1], [], []>} : vector<2x64xf32>, vector<64x256xf32>, vector<2x256xf32> -> vector<2x256xf32>
    %122 = arith.addf %120, %121 : vector<2x256xf32>
    %123 = arith.mulf %122, %24 : vector<2x256xf32>
    %124 = math.tanh %123 : vector<2x256xf32>
    %125 = arith.mulf %24, %124 : vector<2x256xf32>
    %126 = arith.addf %125, %27 : vector<2x256xf32>
    %127 = vector.extract_strided_slice %126 {offsets = [0, 0], sizes = [2, 64], strides = [1, 1]} : vector<2x256xf32> to vector<2x64xf32>
    %128 = vector.extract_strided_slice %126 {offsets = [0, 64], sizes = [2, 64], strides = [1, 1]} : vector<2x256xf32> to vector<2x64xf32>
    %129 = vector.extract_strided_slice %126 {offsets = [0, 128], sizes = [2, 64], strides = [1, 1]} : vector<2x256xf32> to vector<2x64xf32>
    %130 = vector.extract_strided_slice %126 {offsets = [0, 192], sizes = [2, 64], strides = [1, 1]} : vector<2x256xf32> to vector<2x64xf32>
    %131 = arith.mulf %128, %111 : vector<2x64xf32>
    %132 = arith.mulf %127, %129 : vector<2x64xf32>
    %133 = arith.addf %131, %132 : vector<2x64xf32>
    %134 = math.tanh %133 : vector<2x64xf32>
    %135 = arith.mulf %130, %134 : vector<2x64xf32>
    %136 = vector.extract_strided_slice %135 {offsets = [0, 0], sizes = [2, 32], strides = [1, 1]} : vector<2x64xf32> to vector<2x32xf32>
    %c8_24 = arith.constant 8 : index
    %c0_25 = arith.constant 0 : index
    %137 = vector.load %arg4[%c8_24, %c0_25] : memref<16x64xf32, #tpu.memory_space<vmem>>, vector<2x32xf32>
    tpu.vector_store %arg4[%c8_24, %c0_25], %136 {strides = array<i32>} : memref<16x64xf32, #tpu.memory_space<vmem>>, vector<2x32xf32>,
    %138 = vector.extract_strided_slice %135 {offsets = [0, 32], sizes = [2, 32], strides = [1, 1]} : vector<2x64xf32> to vector<2x32xf32>
    %c6_26 = arith.constant 6 : index
    %c32_27 = arith.constant 32 : index
    %139 = vector.load %arg4[%c6_26, %c32_27] : memref<16x64xf32, #tpu.memory_space<vmem>>, vector<2x32xf32>
    tpu.vector_store %arg4[%c6_26, %c32_27], %138 {strides = array<i32>} : memref<16x64xf32, #tpu.memory_space<vmem>>, vector<2x32xf32>,
    %140 = vector.extract_strided_slice %10 {offsets = [10, 0], sizes = [2, 256], strides = [1, 1]} : vector<16x256xf32> to vector<2x256xf32>
    %141 = vector.extract_strided_slice %10 {offsets = [4, 0], sizes = [2, 256], strides = [1, 1]} : vector<16x256xf32> to vector<2x256xf32>
    %142 = arith.select %21, %140, %141 : vector<2x256xi1>, vector<2x256xf32>
    %cst_28 = arith.constant dense<0.000000e+00> : vector<2x256xf32>
    %143 = tpu.matmul %135, %11, %cst_28 {dimension_numbers = #tpu.dot_dimension_numbers<[1], [0], [0], [1], [0, 0, 1, 1], [], []>} : vector<2x64xf32>, vector<64x256xf32>, vector<2x256xf32> -> vector<2x256xf32>
    %144 = arith.addf %142, %143 : vector<2x256xf32>
    %145 = arith.mulf %144, %24 : vector<2x256xf32>
    %146 = math.tanh %145 : vector<2x256xf32>
    %147 = arith.mulf %24, %146 : vector<2x256xf32>
    %148 = arith.addf %147, %27 : vector<2x256xf32>
    %149 = vector.extract_strided_slice %148 {offsets = [0, 0], sizes = [2, 64], strides = [1, 1]} : vector<2x256xf32> to vector<2x64xf32>
    %150 = vector.extract_strided_slice %148 {offsets = [0, 64], sizes = [2, 64], strides = [1, 1]} : vector<2x256xf32> to vector<2x64xf32>
    %151 = vector.extract_strided_slice %148 {offsets = [0, 128], sizes = [2, 64], strides = [1, 1]} : vector<2x256xf32> to vector<2x64xf32>
    %152 = vector.extract_strided_slice %148 {offsets = [0, 192], sizes = [2, 64], strides = [1, 1]} : vector<2x256xf32> to vector<2x64xf32>
    %153 = arith.mulf %150, %133 : vector<2x64xf32>
    %154 = arith.mulf %149, %151 : vector<2x64xf32>
    %155 = arith.addf %153, %154 : vector<2x64xf32>
    %156 = math.tanh %155 : vector<2x64xf32>
    %157 = arith.mulf %152, %156 : vector<2x64xf32>
    %158 = vector.extract_strided_slice %157 {offsets = [0, 0], sizes = [2, 32], strides = [1, 1]} : vector<2x64xf32> to vector<2x32xf32>
    %c10_29 = arith.constant 10 : index
    %c0_30 = arith.constant 0 : index
    %159 = vector.load %arg4[%c10_29, %c0_30] : memref<16x64xf32, #tpu.memory_space<vmem>>, vector<2x32xf32>
    tpu.vector_store %arg4[%c10_29, %c0_30], %158 {strides = array<i32>} : memref<16x64xf32, #tpu.memory_space<vmem>>, vector<2x32xf32>,
    %160 = vector.extract_strided_slice %157 {offsets = [0, 32], sizes = [2, 32], strides = [1, 1]} : vector<2x64xf32> to vector<2x32xf32>
    %c4_31 = arith.constant 4 : index
    %c32_32 = arith.constant 32 : index
    %161 = vector.load %arg4[%c4_31, %c32_32] : memref<16x64xf32, #tpu.memory_space<vmem>>, vector<2x32xf32>
    tpu.vector_store %arg4[%c4_31, %c32_32], %160 {strides = array<i32>} : memref<16x64xf32, #tpu.memory_space<vmem>>, vector<2x32xf32>,
    %162 = vector.extract_strided_slice %10 {offsets = [12, 0], sizes = [2, 256], strides = [1, 1]} : vector<16x256xf32> to vector<2x256xf32>
    %163 = vector.extract_strided_slice %10 {offsets = [2, 0], sizes = [2, 256], strides = [1, 1]} : vector<16x256xf32> to vector<2x256xf32>
    %164 = arith.select %21, %162, %163 : vector<2x256xi1>, vector<2x256xf32>
    %cst_33 = arith.constant dense<0.000000e+00> : vector<2x256xf32>
    %165 = tpu.matmul %157, %11, %cst_33 {dimension_numbers = #tpu.dot_dimension_numbers<[1], [0], [0], [1], [0, 0, 1, 1], [], []>} : vector<2x64xf32>, vector<64x256xf32>, vector<2x256xf32> -> vector<2x256xf32>
    %166 = arith.addf %164, %165 : vector<2x256xf32>
    %167 = arith.mulf %166, %24 : vector<2x256xf32>
    %168 = math.tanh %167 : vector<2x256xf32>
    %169 = arith.mulf %24, %168 : vector<2x256xf32>
    %170 = arith.addf %169, %27 : vector<2x256xf32>
    %171 = vector.extract_strided_slice %170 {offsets = [0, 0], sizes = [2, 64], strides = [1, 1]} : vector<2x256xf32> to vector<2x64xf32>
    %172 = vector.extract_strided_slice %170 {offsets = [0, 64], sizes = [2, 64], strides = [1, 1]} : vector<2x256xf32> to vector<2x64xf32>
    %173 = vector.extract_strided_slice %170 {offsets = [0, 128], sizes = [2, 64], strides = [1, 1]} : vector<2x256xf32> to vector<2x64xf32>
    %174 = vector.extract_strided_slice %170 {offsets = [0, 192], sizes = [2, 64], strides = [1, 1]} : vector<2x256xf32> to vector<2x64xf32>
    %175 = arith.mulf %172, %155 : vector<2x64xf32>
    %176 = arith.mulf %171, %173 : vector<2x64xf32>
    %177 = arith.addf %175, %176 : vector<2x64xf32>
    %178 = math.tanh %177 : vector<2x64xf32>
    %179 = arith.mulf %174, %178 : vector<2x64xf32>
    %180 = vector.extract_strided_slice %179 {offsets = [0, 0], sizes = [2, 32], strides = [1, 1]} : vector<2x64xf32> to vector<2x32xf32>
    %c12_34 = arith.constant 12 : index
    %c0_35 = arith.constant 0 : index
    %181 = vector.load %arg4[%c12_34, %c0_35] : memref<16x64xf32, #tpu.memory_space<vmem>>, vector<2x32xf32>
    tpu.vector_store %arg4[%c12_34, %c0_35], %180 {strides = array<i32>} : memref<16x64xf32, #tpu.memory_space<vmem>>, vector<2x32xf32>,
    %182 = vector.extract_strided_slice %179 {offsets = [0, 32], sizes = [2, 32], strides = [1, 1]} : vector<2x64xf32> to vector<2x32xf32>
    %c2_36 = arith.constant 2 : index
    %c32_37 = arith.constant 32 : index
    %183 = vector.load %arg4[%c2_36, %c32_37] : memref<16x64xf32, #tpu.memory_space<vmem>>, vector<2x32xf32>
    tpu.vector_store %arg4[%c2_36, %c32_37], %182 {strides = array<i32>} : memref<16x64xf32, #tpu.memory_space<vmem>>, vector<2x32xf32>,
    %184 = vector.extract_strided_slice %10 {offsets = [14, 0], sizes = [2, 256], strides = [1, 1]} : vector<16x256xf32> to vector<2x256xf32>
    %185 = vector.extract_strided_slice %10 {offsets = [0, 0], sizes = [2, 256], strides = [1, 1]} : vector<16x256xf32> to vector<2x256xf32>
    %186 = arith.select %21, %184, %185 : vector<2x256xi1>, vector<2x256xf32>
    %cst_38 = arith.constant dense<0.000000e+00> : vector<2x256xf32>
    %187 = tpu.matmul %179, %11, %cst_38 {dimension_numbers = #tpu.dot_dimension_numbers<[1], [0], [0], [1], [0, 0, 1, 1], [], []>} : vector<2x64xf32>, vector<64x256xf32>, vector<2x256xf32> -> vector<2x256xf32>
    %188 = arith.addf %186, %187 : vector<2x256xf32>
    %189 = arith.mulf %188, %24 : vector<2x256xf32>
    %190 = math.tanh %189 : vector<2x256xf32>
    %191 = arith.mulf %24, %190 : vector<2x256xf32>
    %192 = arith.addf %191, %27 : vector<2x256xf32>
    %193 = vector.extract_strided_slice %192 {offsets = [0, 0], sizes = [2, 64], strides = [1, 1]} : vector<2x256xf32> to vector<2x64xf32>
    %194 = vector.extract_strided_slice %192 {offsets = [0, 64], sizes = [2, 64], strides = [1, 1]} : vector<2x256xf32> to vector<2x64xf32>
    %195 = vector.extract_strided_slice %192 {offsets = [0, 128], sizes = [2, 64], strides = [1, 1]} : vector<2x256xf32> to vector<2x64xf32>
    %196 = vector.extract_strided_slice %192 {offsets = [0, 192], sizes = [2, 64], strides = [1, 1]} : vector<2x256xf32> to vector<2x64xf32>
    %197 = arith.mulf %194, %177 : vector<2x64xf32>
    %198 = arith.mulf %193, %195 : vector<2x64xf32>
    %199 = arith.addf %197, %198 : vector<2x64xf32>
    %200 = math.tanh %199 : vector<2x64xf32>
    %201 = arith.mulf %196, %200 : vector<2x64xf32>
    %202 = vector.extract_strided_slice %201 {offsets = [0, 0], sizes = [2, 32], strides = [1, 1]} : vector<2x64xf32> to vector<2x32xf32>
    %c14_39 = arith.constant 14 : index
    %c0_40 = arith.constant 0 : index
    %203 = vector.load %arg4[%c14_39, %c0_40] : memref<16x64xf32, #tpu.memory_space<vmem>>, vector<2x32xf32>
    tpu.vector_store %arg4[%c14_39, %c0_40], %202 {strides = array<i32>} : memref<16x64xf32, #tpu.memory_space<vmem>>, vector<2x32xf32>,
    %204 = vector.extract_strided_slice %201 {offsets = [0, 32], sizes = [2, 32], strides = [1, 1]} : vector<2x64xf32> to vector<2x32xf32>
    %c0_41 = arith.constant 0 : index
    %c32_42 = arith.constant 32 : index
    %205 = vector.load %arg4[%c0_41, %c32_42] : memref<16x64xf32, #tpu.memory_space<vmem>>, vector<2x32xf32>
    tpu.vector_store %arg4[%c0_41, %c32_42], %204 {strides = array<i32>} : memref<16x64xf32, #tpu.memory_space<vmem>>, vector<2x32xf32>,
    %c0_43 = arith.constant 0 : index
    %c0_44 = arith.constant 0 : index
    %206 = vector.load %arg2[%c0_43, %c0_44] : memref<72x128xf32, #tpu.memory_space<vmem>>, vector<64x128xf32>
    %c64_45 = arith.constant 64 : index
    %c0_46 = arith.constant 0 : index
    %207 = vector.load %arg2[%c64_45, %c0_46] : memref<72x128xf32, #tpu.memory_space<vmem>>, vector<1x128xf32>
    %c0_47 = arith.constant 0 : index
    %c0_48 = arith.constant 0 : index
    %208 = vector.load %arg4[%c0_47, %c0_48] : memref<16x64xf32, #tpu.memory_space<vmem>>, vector<16x64xf32>
    %cst_49 = arith.constant dense<0.000000e+00> : vector<16x128xf32>
    %209 = tpu.matmul %208, %206, %cst_49 {dimension_numbers = #tpu.dot_dimension_numbers<[1], [0], [0], [1], [0, 0, 1, 1], [], []>} : vector<16x64xf32>, vector<64x128xf32>, vector<16x128xf32> -> vector<16x128xf32>
    %210 = vector.broadcast %207 : vector<1x128xf32> to vector<16x128xf32>
    %211 = arith.addf %209, %210 : vector<16x128xf32>
    %c0_50 = arith.constant 0 : index
    %c0_51 = arith.constant 0 : index
    %212 = vector.load %arg3[%c0_50, %c0_51] : memref<16x128xf32, #tpu.memory_space<vmem>>, vector<16x128xf32>
    tpu.vector_store %arg3[%c0_50, %c0_51], %211 {strides = array<i32>} : memref<16x128xf32, #tpu.memory_space<vmem>>, vector<16x128xf32>,
    return
  }
}

</mosaic_0001>

<bundles_post_ra>
// kernel: ner_rnn_forward.1
= control target key start
LH: loop header
LB: loop body
LE: loop exit
PB: predicated region body
PF: predicated region fallthrough
CT: control target
= control target key end

     0   :  { %v1470_v2 = vmov 0   ;;  %v1471_v7 = vmov 0.0   ;;  %vm65_vm0 = vcmask 1041408   ;;  %s1881_s0 = inlined_call_operand.vmem [shape: s32[16,1], index: 0, kind: input, shape index: {}]   ;;  %s1882_s1 = inlined_call_operand.vmem [shape: f32[128,256], index: 1, kind: input, shape index: {}]   ;;  %s1883_s2 = inlined_call_operand.vmem [shape: f32[72,128], index: 2, kind: input, shape index: {}]   ;;  %s1884_s3 = inlined_call_operand.hbm [shape: f32[16,128], index: 3, kind: output, shape index: {}]  }
   0x1   :  { %v15_v0 = vld [vmem:[%s1881_s0] sm:$0xff]  ;;  %v32_v1 = vld [vmem:[%s1882_s1 + $0x8] sm:$0xff]  ;;  %1397 = vset.pattern.permute.xlu0 %v1470_v2  ;;  %v34_v4 = vld [vmem:[%s1882_s1 + $0x18] sm:$0xff]  ;;  %136 = vmatprep.mubr.f32.mxu0 %v1471_v7 }
   0x2   :  { %v16_v3 = vld [vmem:[%s1881_s0 + $0x8] sm:$0xff]  ;;  %v31_v5 = vld [vmem:[%s1882_s1] sm:$0xff]  ;;  %v33_v6 = vld [vmem:[%s1882_s1 + $0x10] sm:$0xff]  ;;  %20 = vperm.xlu0 %1397, %v15_v0   ;;  %v1234_v8 = vpack.c.bf16 %v34_v4, %v32_v1  ;;  %256 = vmatprep.mubr.f32.mxu1 %v1471_v7 }
   0x3   :  { %v1236_v9 = vpack.c.bf16 %v33_v6, %v31_v5  ;;  %v36_v10 = vld [vmem:[%s1882_s1 + $0x28] sm:$0xff]  ;;  %v38_v11 = vld [vmem:[%s1882_s1 + $0x38] sm:$0xff]  ;;  %v35_v12 = vld [vmem:[%s1882_s1 + $0x20] sm:$0xff] }
   0x4   :  { %v1238_v13 = vpack.c.bf16 %v38_v11, %v36_v10  ;;  %v37_v14 = vld [vmem:[%s1882_s1 + $0x30] sm:$0xff]  ;;  %v150_v15 = vld [vmem:[%s1882_s1 + $0x88] sm:$0xff]  ;;  %v152_v16 = vld [vmem:[%s1882_s1 + $0x98] sm:$0xff]  ;;  %1235 = vmatprep.subr.bf16.mxu0 %v1234_v8 }
   0x5   :  { %v1535_v17 = vpack.c.bf16 %v152_v16, %v150_v15  ;;  %v149_v18 = vld [vmem:[%s1882_s1 + $0x80] sm:$0xff]  ;;  %v151_v19 = vld [vmem:[%s1882_s1 + $0x90] sm:$0xff]  ;;  %v40_v20 = vld [vmem:[%s1882_s1 + $0x48] sm:$0xff]  ;;  %1237 = vmatpush1.bf16.msra.mxu0 %v1236_v9  ;;  %v1240_v21 = vpack.c.bf16 %v37_v14, %v35_v12 }
   0x6   :  { %v1546_v22 = vpack.c.bf16 %v151_v19, %v149_v18  ;;  %v42_v23 = vld [vmem:[%s1882_s1 + $0x58] sm:$0xff]  ;;  %v39_v24 = vld [vmem:[%s1882_s1 + $0x40] sm:$0xff]  ;;  %v41_v25 = vld [vmem:[%s1882_s1 + $0x50] sm:$0xff]  ;;  %23 = vperm.xlu0 %1397, %v16_v3   ;;  %1239 = vmatprep.subr.bf16.mxu0 %v1238_v13 }
   0x7   :  { %v1242_v26 = vpack.c.bf16 %v42_v23, %v40_v20  ;;  %v154_v27 = vld [vmem:[%s1882_s1 + $0xa8] sm:$0xff]  ;;  %v156_v28 = vld [vmem:[%s1882_s1 + $0xb8] sm:$0xff]  ;;  %v153_v29 = vld [vmem:[%s1882_s1 + $0xa0] sm:$0xff]  ;;  %1247 = vmatprep.subr.bf16.mxu1 %v1535_v17  ;;  %v1244_v35 = vpack.c.bf16 %v41_v25, %v39_v24 }
   0x8   :  { %v1567_v30 = vpack.c.bf16 %v156_v28, %v154_v27  ;;  %v155_v31 = vld [vmem:[%s1882_s1 + $0xb0] sm:$0xff]  ;;  %1249 = vmatpush1.bf16.msra.mxu1 %v1546_v22  ;;  %v158_v33 = vld [vmem:[%s1882_s1 + $0xc8] sm:$0xff]  ;;  %v160_v34 = vld [vmem:[%s1882_s1 + $0xd8] sm:$0xff] }
   0x9   :  { %v1573_v32 = vpack.c.bf16 %v155_v31, %v153_v29  ;;  %1241 = vmatpush1.bf16.msra.mxu0 %v1240_v21  ;;  %v1582_v36 = vpack.c.bf16 %v160_v34, %v158_v33  ;;  %v157_v37 = vld [vmem:[%s1882_s1 + $0xc0] sm:$0xff]  ;;  %v159_v38 = vld [vmem:[%s1882_s1 + $0xd0] sm:$0xff]  ;;  %v162_v39 = vld [vmem:[%s1882_s1 + $0xe8] sm:$0xff] }
   0xa   :  { %1251 = vmatprep.subr.bf16.mxu1 %v1567_v30  ;;  %1243 = vmatprep.subr.bf16.mxu0 %v1242_v26  ;;  %v164_v40 = vld [vmem:[%s1882_s1 + $0xf8] sm:$0xff]  ;;  %v44_v41 = vld [vmem:[%s1882_s1 + $0x68] sm:$0x3] }
   0xb   :  { %8 = vsyncpa [#allocation4], 0  ;;  %v1600_v42 = vpack.c.bf16 %v159_v38, %v157_v37  ;;  %v1603_v43 = vpack.c.bf16 %v164_v40, %v162_v39  ;;  %v161_v44 = vld [vmem:[%s1882_s1 + $0xe0] sm:$0xff]  ;;  %v163_v45 = vld [vmem:[%s1882_s1 + $0xf0] sm:$0xff]  ;;  %v17_v48 = vlaneseq  ;;  %vm58_vm1 = vcmask 408576   ;;  %s1474_s12 = smov [#allocation3]  }
   0xc   :  { %1253 = vmatpush1.bf16.msra.mxu1 %v1573_v32  ;;  %v43_v46 = vld [vmem:[%s1882_s1 + $0x60] sm:$0x3]  ;;  %v1615_v47 = vpack.c.bf16 %v163_v45, %v161_v44  ;;  %v1190_v58 = vld [vmem:[%s1882_s1 + $0x70] ss:$8 sm:$0x3]  ;;  %v1472_v29 = vmov 0.5  }
   0xd   :  { %1245 = vmatpush1.bf16.msra.mxu0 %v1244_v35  ;;  %1255 = vmatprep.subr.bf16.mxu1 %v1582_v36  ;;  %v18_v49 = vand.u32 127, %v17_v48  ;;  %v49_v56 = vshrl.u32 %v17_v48, 7  ;;  %s1473_s1 = smov 64   ;;  %vm286_vm7 = vcmask 254976   ;;  %vm288_vm8 = vcmask 517376   ;;  %s1177_s13 = sshll.u32 %s1474_s12, 4  ;;  %s1178_s13 = int_to_ptr.vmem [resolvable:$true] %s1177_s13 }
   0xe   :  { %1191 = vmatprep.subr.msk.mxu0 %vm65_vm0, %v44_v41  ;;  %vm188_vm9 = vcmask 523264   ;;  %vm401_vm10 = vcmask 257026   ;;  %vm403_vm11 = vcmask 519426   ;;  %vm625_vm12 = vcmask 261126   ;;  %s1446_s14 = scalar_lea.vmem %s1178_s13, 256  ;;  %p1451_p1 = scmp.lt.s32.totalorder %s1178_s13, %s1178_s13 }
   0xf   :  { %v50_v57 = vsub.s32 0, %v49_v56  ;;  %v54_v59 = vsub.s32 1, %v49_v56  ;;  %v165_v60 = vadd.s32 128, %v18_v49  ;;  %v172_v0 = vand.u32 63, %v18_v49  ;;  %p1447_p0 = scmp.ne.s32.totalorder %s1178_s13, %s1446_s14  ;;  %p1452_p2 = scmp.lt.s32.totalorder %s1446_s14, %s1446_s14 }
  0x10   :  { %1257 = vmatpush1.bf16.msra.mxu1 %v1600_v42  ;;  %vm627_vm13 = vcmask 523526   ;;  %vm513_vm14 = vcmask 259076   ;;  %vm515_vm15 = vcmask 521476  }
  0x11   :  { %1192 = vmatpush1.msk.msra.mxu0 %vm65_vm0, %v43_v46  ;;  %1259 = vmatprep.subr.bf16.mxu1 %v1603_v43  ;;  %v51_v61 = vrot.slane %v1190_v58, %v50_v57  ;;  %v55_v62 = vrot.slane %v1190_v58, %v54_v59  ;;  %v173_v1 = vand.u32 63, %v165_v60  ;;  %vm1646_vm4 = vcmp.lt.s32.totalorder %v172_v0, 32  ;;  %p1453_p3 = por %p1452_p2, %p1451_p1 }
  0x12   :  { %1263 = vmatprep.subr.bf16.mxu0 %v1535_v17  ;;  %vm169_vm6 = vcmp.lt.s32.totalorder %v165_v60, 192 }
  0x13   :  { %vm1650_vm5 = vcmp.lt.s32.totalorder %v173_v1, 32  ;;  %v1680_v31 = vsel %vm169_vm6, 1.0, %v1472_v29  ;;  %v1693_v41 = vsel %vm169_vm6, 0.0, %v1472_v29  ;;  %p1454_p4 = pnand %p1453_p3, %p1447_p0 }
  0x14   :  { %1261 = vmatpush1.bf16.msra.mxu1 %v1615_v47 }
  0x15   :  { %1279 = vmatprep.subr.bf16.mxu1 %v1535_v17 }
  0x17   :  { %257 = vmatmul.mubr.f32.vlgmr.msra.gmra.mrb[0].mxu1 %v1471_v7 }
  0x18   :  { %1281 = vmatpush1.bf16.msra.mxu1 %v1546_v22  ;;  %474 = vmatprep.mubr.f32.mxu1 %v1471_v7 }
  0x19   :  { %1283 = vmatprep.subr.bf16.mxu1 %v1567_v30 }
  0x1c   :  { %1285 = vmatpush1.bf16.msra.mxu1 %v1573_v32 }
  0x1d   :  { %1287 = vmatprep.subr.bf16.mxu1 %v1582_v36 }
  0x20   :  { %1289 = vmatpush1.bf16.msra.mxu1 %v1600_v42 }
  0x21   :  { %1291 = vmatprep.subr.bf16.mxu1 %v1603_v43 }
  0x24   :  { %1293 = vmatpush1.bf16.msra.mxu1 %v1615_v47 }
  0x25   :  { %1311 = vmatprep.subr.bf16.mxu1 %v1535_v17 }
  0x81   :  { %v21_v50 = vpop.permute.xlu0 %20 }
  0x82   :  { %vm25_vm2 = vcmp.eq.s32.totalorder %v18_v49, %v21_v50 }
  0x83   :  { %v1188_v51 = vsel %vm25_vm2, 1.0, %v1471_v7 }
  0x84   :  { %1193 = vmatmul.mubr.msk.f32.vlgmr.msra.gmra.mrb[0].mxu0 %vm58_vm1, %v1188_v51 }
  0x85   :  { %v24_v52 = vpop.permute.xlu0 %23  ;;  %142 = vmatprep.mubr.f32.mxu0 %v1471_v7  ;;  %1265 = vmatpush1.bf16.msra.mxu0 %v1546_v22 }
  0x86   :  { %vm26_vm3 = vcmp.eq.s32.totalorder %v18_v49, %v24_v52  ;;  %1267 = vmatprep.subr.bf16.mxu0 %v1567_v30 }
  0x87   :  { %v1189_v53 = vsel %vm26_vm3, 1.0, %v1471_v7 }
  0x88   :  { %1194 = vmatmul.mubr.msk.f32.gmra.mrb[2].mxu0 %vm58_vm1, %v1189_v53 }
  0x89   :  { %1269 = vmatpush1.bf16.msra.mxu0 %v1573_v32  ;;  %362 = vmatprep.mubr.f32.mxu0 %v1471_v7 }
  0x8a   :  { %1271 = vmatprep.subr.bf16.mxu0 %v1582_v36 }
  0x8d   :  { %1273 = vmatpush1.bf16.msra.mxu0 %v1600_v42 }
  0x8e   :  { %1275 = vmatprep.subr.bf16.mxu0 %v1603_v43 }
  0x91   :  { %1277 = vmatpush1.bf16.msra.mxu0 %v1615_v47 }
  0x92   :  { %1295 = vmatprep.subr.bf16.mxu0 %v1535_v17 }
  0xea   :  { %v258_v54 = vpop.f32.mrb[0].mxu1 }
  0xeb   :  { %v260_v55 = vpop.f32.mrb[1].mxu1 }
 0x157   :  { %v138_v63 = vpop.f32.mrb[0].mxu0 }
 0x158   :  { %v139_v2 = vadd.f32 %v138_v63, %v51_v61  ;;  %v140_v3 = vpop.f32.mrb[1].mxu0 }
 0x159   :  { %v141_v4 = vadd.f32 %v140_v3, %v55_v62 }
 0x15a   :  { %v631_v11 = vrot.slane %v139_v2, 6  ;;  %v741_v12 = vrot.slane %v139_v2, 2 }
 0x15b   :  { %v144_v5 = vpop.f32.mrb[2].mxu0  ;;  %v632_v14 = vrot.slane %v141_v4, 6  ;;  %v742_v15 = vrot.slane %v141_v4, 2 }
 0x15c   :  { %v145_v9 = vadd.f32 %v144_v5, %v51_v61  ;;  %v146_v10 = vpop.f32.mrb[3].mxu0 }
 0x15d   :  { %v147_v13 = vadd.f32 %v146_v10, %v55_v62 }
 0x15e   :  { %v182_v16 = vrot.slane %v145_v9, 6  ;;  %v290_v18 = vrot.slane %v145_v9, 2  ;;  %v1656_v19 = vsel %vm1646_vm4, %v145_v9, %v631_v11  ;;  %v1660_v20 = vsel %vm1646_vm4, %v145_v9, %v741_v12 }
 0x15f   :  { %v183_v21 = vrot.slane %v147_v13, 6  ;;  %v291_v23 = vrot.slane %v147_v13, 2  ;;  %v1664_v24 = vsel %vm1650_vm5, %v147_v13, %v632_v14  ;;  %v1668_v25 = vsel %vm1650_vm5, %v147_v13, %v742_v15 }
 0x160   :  { %v1672_v26 = vsel %vm1646_vm4, %v139_v2, %v182_v16  ;;  %v1676_v27 = vsel %vm1646_vm4, %v139_v2, %v290_v18 }
 0x161   :  { %v263_v28 = vadd.f32 %v258_v54, %v1672_v26  ;;  %v1684_v33 = vsel %vm1650_vm5, %v141_v4, %v183_v21  ;;  %v1688_v34 = vsel %vm1650_vm5, %v141_v4, %v291_v23 }
 0x162   :  { %v264_v35 = vadd.f32 %v260_v55, %v1684_v33 }
 0x163   :  { %v265_v37 = vmul.f32 0.5, %v263_v28 }
 0x164   :  { %v266_v38 = vmul.f32 %v264_v35, %v1680_v31 }
 0x165   :  { %1398 = vtanh.f32 %v265_v37 }
 0x166   :  { %1400 = vtanh.f32 %v266_v38 }
 0x16f   :  { %v1399_v39 = vpop.eup %1398 }
 0x170   :  { %v1401_v40 = vpop.eup %1400  ;;  %v269_v44 = vmul.f32 0.5, %v1399_v39 }
 0x171   :  { %v270_v45 = vmul.f32 %v1401_v40, %v1680_v31 }
 0x172   :  { %v271_v46 = vadd.f32 0.5, %v269_v44 }
 0x173   :  { %v272_v48 = vadd.f32 %v270_v45, %v1693_v41 }
 0x174   :  { %v273_v50 = vmul.f32 0.0, %v271_v46 }
 0x175   :  { %v274_v49 = vmul.f32 %v272_v48, %v271_v46 }
 0x177   :  { %276 = vrot.lane.b32.xlu1 %v274_v49, %s1473_s1 }
 0x1e9   :  { %v277_v51 = vpop.permute.xlu1 %276 }
 0x1ea   :  { %v279_v52 = vadd.f32 %v277_v51, %v273_v50 }
 0x1ec   :  { %1402 = vtanh.f32 %v279_v52  ;;  %v386_v4 = vrot.slane %v279_v52, 6 }
 0x1f6   :  { %v1403_v53 = vpop.eup %1402 }
 0x1f7   :  { %v281_v54 = vmul.f32 %v1403_v53, %v272_v48 }
 0x1f9   :  { %283 = vrot.lane.b32.xlu1 %v281_v54, %s1473_s1 }
 0x26b   :  { %v284_v55 = vpop.permute.xlu1 %283 }
 0x26c   :  { %287 = vst.msk [vmem:[#allocation2] sm:$0x3] %vm286_vm7, %v284_v55  ;;  %1195 = vmatmul.mubr.msk.f32.vlgmr.msra.gmra.mrb[4].mxu0 %vm188_vm9, %v284_v55 }
 0x26d   :  { %289 = vst.msk [vmem:[#allocation2 + $0xe] sm:$0x3] %vm288_vm8, %v284_v55  ;;  %1297 = vmatpush1.bf16.msra.mxu0 %v1546_v22  ;;  %586 = vmatprep.mubr.f32.mxu0 %v1471_v7 }
 0x26e   :  { %1299 = vmatprep.subr.bf16.mxu0 %v1567_v30 }
 0x271   :  { %1301 = vmatpush1.bf16.msra.mxu0 %v1573_v32 }
 0x272   :  { %1303 = vmatprep.subr.bf16.mxu0 %v1582_v36 }
 0x275   :  { %1305 = vmatpush1.bf16.msra.mxu0 %v1600_v42 }
 0x276   :  { %1307 = vmatprep.subr.bf16.mxu0 %v1603_v43 }
 0x279   :  { %1309 = vmatpush1.bf16.msra.mxu0 %v1615_v47 }
 0x27a   :  { %1327 = vmatprep.subr.bf16.mxu0 %v1535_v17 }
 0x33f   :  { %v364_v56 = vpop.f32.mrb[4].mxu0 }
 0x340   :  { %v371_v57 = vrot.slane %v364_v56, 6  ;;  %v366_v58 = vpop.f32.mrb[5].mxu0 }
 0x341   :  { %v372_v59 = vrot.slane %v366_v58, 6 }
 0x342   :  { %v375_v60 = vadd.f32 %v371_v57, %v1676_v27 }
 0x343   :  { %v376_v61 = vadd.f32 %v372_v59, %v1688_v34 }
 0x344   :  { %v377_v62 = vmul.f32 0.5, %v375_v60 }
 0x345   :  { %v378_v63 = vmul.f32 %v376_v61, %v1680_v31 }
 0x346   :  { %1404 = vtanh.f32 %v377_v62 }
 0x347   :  { %1406 = vtanh.f32 %v378_v63 }
 0x350   :  { %v1405_v0 = vpop.eup %1404 }
 0x351   :  { %v1407_v1 = vpop.eup %1406  ;;  %v381_v2 = vmul.f32 0.5, %v1405_v0 }
 0x352   :  { %v382_v3 = vmul.f32 %v1407_v1, %v1680_v31 }
 0x353   :  { %v383_v5 = vadd.f32 0.5, %v381_v2 }
 0x354   :  { %v384_v6 = vadd.f32 %v382_v3, %v1693_v41 }
 0x355   :  { %v388_v8 = vmul.f32 %v386_v4, %v383_v5 }
 0x356   :  { %v389_v9 = vmul.f32 %v384_v6, %v383_v5 }
 0x358   :  { %391 = vrot.lane.b32.xlu0 %v389_v9, %s1473_s1 }
 0x3ca   :  { %v392_v10 = vpop.permute.xlu0 %391 }
 0x3cb   :  { %v394_v11 = vadd.f32 %v392_v10, %v388_v8 }
 0x3cd   :  { %1408 = vtanh.f32 %v394_v11  ;;  %v498_v45 = vrot.slane %v394_v11, 6 }
 0x3d7   :  { %v1409_v12 = vpop.eup %1408 }
 0x3d8   :  { %v1717_v13 = vmul.f32 %v1409_v12, %v384_v6 }
 0x3da   :  { %v405_v14 = vrot.slane %v1717_v13, 2 }
 0x3dc   :  { %406 = vrot.lane.b32.xlu1 %v405_v14, %s1473_s1 }
 0x44e   :  { %v407_v15 = vpop.permute.xlu1 %406 }
 0x44f   :  { %1196 = vmatmul.mubr.msk.f32.vlgmr.msra.gmra.mrb[2].mxu1 %vm188_vm9, %v407_v15 }
 0x450   :  { %1313 = vmatpush1.bf16.msra.mxu1 %v1546_v22  ;;  %706 = vmatprep.mubr.f32.mxu1 %v1471_v7 }
 0x451   :  { %1315 = vmatprep.subr.bf16.mxu1 %v1567_v30 }
 0x454   :  { %1317 = vmatpush1.bf16.msra.mxu1 %v1573_v32 }
 0x455   :  { %1319 = vmatprep.subr.bf16.mxu1 %v1582_v36 }
 0x458   :  { %1321 = vmatpush1.bf16.msra.mxu1 %v1600_v42 }
 0x459   :  { %1323 = vmatprep.subr.bf16.mxu1 %v1603_v43 }
 0x45c   :  { %1325 = vmatpush1.bf16.msra.mxu1 %v1615_v47 }
 0x45d   :  { %1343 = vmatprep.subr.bf16.mxu1 %v1535_v17 }
 0x522   :  { %v476_v16 = vpop.f32.mrb[2].mxu1 }
 0x523   :  { %v483_v18 = vrot.slane %v476_v16, 4  ;;  %v478_v21 = vpop.f32.mrb[3].mxu1 }
 0x524   :  { %v484_v23 = vrot.slane %v478_v21, 4 }
 0x525   :  { %v487_v28 = vadd.f32 %v483_v18, %v1672_v26 }
 0x526   :  { %v488_v29 = vadd.f32 %v484_v23, %v1684_v33 }
 0x527   :  { %v489_v35 = vmul.f32 0.5, %v487_v28 }
 0x528   :  { %v490_v37 = vmul.f32 %v488_v29, %v1680_v31 }
 0x529   :  { %1410 = vtanh.f32 %v489_v35 }
 0x52a   :  { %1412 = vtanh.f32 %v490_v37 }
 0x533   :  { %v1411_v38 = vpop.eup %1410 }
 0x534   :  { %v1413_v39 = vpop.eup %1412  ;;  %v493_v40 = vmul.f32 0.5, %v1411_v38 }
 0x535   :  { %v494_v44 = vmul.f32 %v1413_v39, %v1680_v31 }
 0x536   :  { %v495_v46 = vadd.f32 0.5, %v493_v40 }
 0x537   :  { %v496_v48 = vadd.f32 %v494_v44, %v1693_v41 }
 0x538   :  { %v500_v49 = vmul.f32 %v498_v45, %v495_v46 }
 0x539   :  { %v501_v50 = vmul.f32 %v496_v48, %v495_v46 }
 0x53b   :  { %503 = vrot.lane.b32.xlu0 %v501_v50, %s1473_s1 }
 0x5ad   :  { %v504_v26 = vpop.permute.xlu0 %503 }
 0x5ae   :  { %v506_v33 = vadd.f32 %v504_v26, %v500_v49 }
 0x5b0   :  { %1414 = vtanh.f32 %v506_v33  ;;  %v610_v3 = vrot.slane %v506_v33, 6 }
 0x5ba   :  { %v1415_v51 = vpop.eup %1414 }
 0x5bb   :  { %v1737_v52 = vmul.f32 %v1415_v51, %v496_v48 }
 0x5bd   :  { %v517_v53 = vrot.slane %v1737_v52, 4 }
 0x5bf   :  { %518 = vrot.lane.b32.xlu1 %v517_v53, %s1473_s1 }
 0x631   :  { %v519_v54 = vpop.permute.xlu1 %518 }
 0x632   :  { %1197 = vmatmul.mubr.msk.f32.vlgmr.msra.gmra.mrb[6].mxu0 %vm188_vm9, %v519_v54 }
 0x633   :  { %1329 = vmatpush1.bf16.msra.mxu0 %v1546_v22  ;;  %813 = vmatprep.mubr.f32.mxu0 %v1471_v7 }
 0x634   :  { %1331 = vmatprep.subr.bf16.mxu0 %v1567_v30 }
 0x637   :  { %1333 = vmatpush1.bf16.msra.mxu0 %v1573_v32 }
 0x638   :  { %1335 = vmatprep.subr.bf16.mxu0 %v1582_v36 }
 0x63b   :  { %1337 = vmatpush1.bf16.msra.mxu0 %v1600_v42 }
 0x63c   :  { %1339 = vmatprep.subr.bf16.mxu0 %v1603_v43 }
 0x63f   :  { %1341 = vmatpush1.bf16.msra.mxu0 %v1615_v47 }
 0x640   :  { %1359 = vmatprep.subr.bf16.mxu0 %v1535_v17 }
 0x705   :  { %v588_v55 = vpop.f32.mrb[6].mxu0 }
 0x706   :  { %v595_v56 = vrot.slane %v588_v55, 2  ;;  %v590_v57 = vpop.f32.mrb[7].mxu0 }
 0x707   :  { %v596_v58 = vrot.slane %v590_v57, 2 }
 0x708   :  { %v599_v59 = vadd.f32 %v595_v56, %v1676_v27 }
 0x709   :  { %v600_v60 = vadd.f32 %v596_v58, %v1688_v34 }
 0x70a   :  { %v601_v61 = vmul.f32 0.5, %v599_v59 }
 0x70b   :  { %v602_v62 = vmul.f32 %v600_v60, %v1680_v31 }
 0x70c   :  { %1416 = vtanh.f32 %v601_v61 }
 0x70d   :  { %1418 = vtanh.f32 %v602_v62 }
 0x716   :  { %v1417_v63 = vpop.eup %1416 }
 0x717   :  { %v1419_v0 = vpop.eup %1418  ;;  %v605_v1 = vmul.f32 0.5, %v1417_v63 }
 0x718   :  { %v606_v2 = vmul.f32 %v1419_v0, %v1680_v31 }
 0x719   :  { %v607_v17 = vadd.f32 0.5, %v605_v1 }
 0x71a   :  { %v608_v4 = vadd.f32 %v606_v2, %v1693_v41 }
 0x71b   :  { %v612_v5 = vmul.f32 %v610_v3, %v607_v17 }
 0x71c   :  { %v613_v6 = vmul.f32 %v608_v4, %v607_v17 }
 0x71e   :  { %615 = vrot.lane.b32.xlu0 %v613_v6, %s1473_s1 }
 0x790   :  { %v616_v27 = vpop.permute.xlu0 %615 }
 0x791   :  { %v618_v34 = vadd.f32 %v616_v27, %v612_v5 }
 0x793   :  { %1420 = vtanh.f32 %v618_v34  ;;  %v724_v37 = vrot.slane %v618_v34, 6 }
 0x79d   :  { %v1421_v8 = vpop.eup %1420 }
 0x79e   :  { %v1757_v9 = vmul.f32 %v1421_v8, %v608_v4 }
 0x7a0   :  { %v637_v10 = vrot.slane %v1757_v9, 6 }
 0x7a2   :  { %638 = vrot.lane.b32.xlu1 %v637_v10, %s1473_s1 }
 0x814   :  { %v639_v11 = vpop.permute.xlu1 %638 }
 0x815   :  { %1198 = vmatmul.mubr.msk.f32.vlgmr.msra.gmra.mrb[4].mxu1 %vm188_vm9, %v639_v11 }
 0x816   :  { %1345 = vmatpush1.bf16.msra.mxu1 %v1546_v22  ;;  %923 = vmatprep.mubr.f32.mxu1 %v1471_v7 }
 0x817   :  { %1347 = vmatprep.subr.bf16.mxu1 %v1567_v30 }
 0x81a   :  { %1349 = vmatpush1.bf16.msra.mxu1 %v1573_v32 }
 0x81b   :  { %1351 = vmatprep.subr.bf16.mxu1 %v1582_v36 }
 0x81e   :  { %1353 = vmatpush1.bf16.msra.mxu1 %v1600_v42 }
 0x81f   :  { %1355 = vmatprep.subr.bf16.mxu1 %v1603_v43 }
 0x822   :  { %1357 = vmatpush1.bf16.msra.mxu1 %v1615_v47 }
 0x8e8   :  { %v708_v12 = vpop.f32.mrb[4].mxu1 }
 0x8e9   :  { %v713_v14 = vadd.f32 %v708_v12, %v1656_v19  ;;  %v710_v15 = vpop.f32.mrb[5].mxu1 }
 0x8ea   :  { %v714_v16 = vadd.f32 %v710_v15, %v1664_v24 }
 0x8eb   :  { %v715_v18 = vmul.f32 0.5, %v713_v14 }
 0x8ec   :  { %v716_v21 = vmul.f32 %v714_v16, %v1680_v31 }
 0x8ed   :  { %1422 = vtanh.f32 %v715_v18 }
 0x8ee   :  { %1424 = vtanh.f32 %v716_v21 }
 0x8f7   :  { %v1423_v23 = vpop.eup %1422 }
 0x8f8   :  { %v1425_v28 = vpop.eup %1424  ;;  %v719_v29 = vmul.f32 0.5, %v1423_v23 }
 0x8f9   :  { %v720_v35 = vmul.f32 %v1425_v28, %v1680_v31 }
 0x8fa   :  { %v721_v38 = vadd.f32 0.5, %v719_v29 }
 0x8fb   :  { %v722_v39 = vadd.f32 %v720_v35, %v1693_v41 }
 0x8fc   :  { %v726_v40 = vmul.f32 %v724_v37, %v721_v38 }
 0x8fd   :  { %v727_v44 = vmul.f32 %v722_v39, %v721_v38 }
 0x8ff   :  { %729 = vrot.lane.b32.xlu0 %v727_v44, %s1473_s1 }
 0x971   :  { %v730_v45 = vpop.permute.xlu0 %729 }
 0x972   :  { %v732_v46 = vadd.f32 %v730_v45, %v726_v40 }
 0x974   :  { %1426 = vtanh.f32 %v732_v46  ;;  %v837_v55 = vrot.slane %v732_v46, 6 }
 0x97e   :  { %v1427_v48 = vpop.eup %1426 }
 0x97f   :  { %v734_v49 = vmul.f32 %v1427_v48, %v722_v39 }
 0x981   :  { %736 = vrot.lane.b32.xlu1 %v734_v49, %s1473_s1 }
 0x9f3   :  { %v1777_v50 = vpop.permute.xlu1 %736 }
 0x9f4   :  { %1199 = vmatmul.mubr.msk.f32.vlgmr.msra.gmra.mrb[8].mxu0 %vm188_vm9, %v1777_v50 }
 0x9f5   :  { %1361 = vmatpush1.bf16.msra.mxu0 %v1546_v22  ;;  %1033 = vmatprep.mubr.f32.mxu0 %v1471_v7 }
 0x9f6   :  { %1363 = vmatprep.subr.bf16.mxu0 %v1567_v30 }
 0x9f9   :  { %1365 = vmatpush1.bf16.msra.mxu0 %v1573_v32 }
 0x9fa   :  { %1367 = vmatprep.subr.bf16.mxu0 %v1582_v36 }
 0x9fd   :  { %1369 = vmatpush1.bf16.msra.mxu0 %v1600_v42 }
 0x9fe   :  { %1371 = vmatprep.subr.bf16.mxu0 %v1603_v43 }
 0xa01   :  { %1373 = vmatpush1.bf16.msra.mxu0 %v1615_v47 }
 0xac7   :  { %v815_v26 = vpop.f32.mrb[8].mxu0 }
 0xac8   :  { %v822_v33 = vrot.slane %v815_v26, 6  ;;  %v817_v51 = vpop.f32.mrb[9].mxu0 }
 0xac9   :  { %v823_v53 = vrot.slane %v817_v51, 6 }
 0xaca   :  { %v826_v22 = vadd.f32 %v822_v33, %v1660_v20 }
 0xacb   :  { %v827_v7 = vadd.f32 %v823_v53, %v1668_v25 }
 0xacc   :  { %v828_v54 = vmul.f32 0.5, %v826_v22 }
 0xacd   :  { %v829_v30 = vmul.f32 %v827_v7, %v1680_v31 }
 0xace   :  { %1428 = vtanh.f32 %v828_v54 }
 0xacf   :  { %1430 = vtanh.f32 %v829_v30 }
 0xad8   :  { %v1429_v32 = vpop.eup %1428 }
 0xad9   :  { %v1431_v36 = vpop.eup %1430  ;;  %v832_v42 = vmul.f32 0.5, %v1429_v32 }
 0xada   :  { %v833_v43 = vmul.f32 %v1431_v36, %v1680_v31 }
 0xadb   :  { %v834_v47 = vadd.f32 0.5, %v832_v42 }
 0xadc   :  { %v835_v56 = vadd.f32 %v833_v43, %v1693_v41  ;;  %v1078_v43 = vld [vmem:[%s1883_s2 + $0x20] sm:$0xff] }
 0xadd   :  { %v839_v57 = vmul.f32 %v837_v55, %v834_v47  ;;  %v1079_v55 = vld [vmem:[%s1883_s2 + $0x28] sm:$0xff] }
 0xade   :  { %v840_v58 = vmul.f32 %v835_v56, %v834_v47  ;;  %v1382_v47 = vpack.c.bf16 %v1079_v55, %v1078_v43 }
 0xae0   :  { %842 = vrot.lane.b32.xlu0 %v840_v58, %s1473_s1 }
 0xb52   :  { %v843_v59 = vpop.permute.xlu0 %842 }
 0xb53   :  { %v845_v60 = vadd.f32 %v843_v59, %v839_v57 }
 0xb55   :  { %1432 = vtanh.f32 %v845_v60  ;;  %v947_v12 = vrot.slane %v845_v60, 6 }
 0xb5f   :  { %v1433_v61 = vpop.eup %1432 }
 0xb60   :  { %v1795_v62 = vmul.f32 %v1433_v61, %v835_v56  ;;  %v1081_v56 = vld [vmem:[%s1883_s2 + $0x38] sm:$0xff] }
 0xb62   :  { %v854_v63 = vrot.slane %v1795_v62, 2 }
 0xb64   :  { %855 = vrot.lane.b32.xlu1 %v854_v63, %s1473_s1 }
 0xbd6   :  { %v856_v0 = vpop.permute.xlu1 %855 }
 0xbd7   :  { %1200 = vmatmul.mubr.msk.f32.vlgmr.msra.gmra.mrb[6].mxu1 %vm188_vm9, %v856_v0 }
 0xcaa   :  { %v925_v1 = vpop.f32.mrb[6].mxu1 }
 0xcab   :  { %v932_v2 = vrot.slane %v925_v1, 4  ;;  %v927_v3 = vpop.f32.mrb[7].mxu1  ;;  %v1202_v1 = vld [vmem:[%s1883_s2 + $0x40] ss:$0 sm:$0xff] }
 0xcac   :  { %v933_v17 = vrot.slane %v927_v3, 4 }
 0xcad   :  { %v936_v4 = vadd.f32 %v932_v2, %v1656_v19 }
 0xcae   :  { %v937_v5 = vadd.f32 %v933_v17, %v1664_v24 }
 0xcaf   :  { %v938_v6 = vmul.f32 0.5, %v936_v4 }
 0xcb0   :  { %v939_v27 = vmul.f32 %v937_v5, %v1680_v31 }
 0xcb1   :  { %1434 = vtanh.f32 %v938_v6 }
 0xcb2   :  { %1436 = vtanh.f32 %v939_v27 }
 0xcbb   :  { %v1435_v34 = vpop.eup %1434 }
 0xcbc   :  { %v1437_v8 = vpop.eup %1436  ;;  %v942_v10 = vmul.f32 0.5, %v1435_v34 }
 0xcbd   :  { %v943_v11 = vmul.f32 %v1437_v8, %v1680_v31 }
 0xcbe   :  { %v944_v14 = vadd.f32 0.5, %v942_v10 }
 0xcbf   :  { %v945_v15 = vadd.f32 %v943_v11, %v1693_v41 }
 0xcc0   :  { %v949_v16 = vmul.f32 %v947_v12, %v944_v14 }
 0xcc1   :  { %v950_v18 = vmul.f32 %v945_v15, %v944_v14 }
 0xcc3   :  { %952 = vrot.lane.b32.xlu0 %v950_v18, %s1473_s1 }
 0xd35   :  { %v953_v19 = vpop.permute.xlu0 %952 }
 0xd36   :  { %v955_v24 = vadd.f32 %v953_v19, %v949_v16 }
 0xd38   :  { %1438 = vtanh.f32 %v955_v24  ;;  %v1057_v51 = vrot.slane %v955_v24, 6 }
 0xd42   :  { %v1439_v21 = vpop.eup %1438 }
 0xd43   :  { %v957_v23 = vmul.f32 %v1439_v21, %v945_v15 }
 0xd45   :  { %v964_v28 = vrot.slane %v957_v23, 4 }
 0xd47   :  { %965 = vrot.lane.b32.xlu1 %v964_v28, %s1473_s1 }
 0xd4b   :  { %398 = vrot.lane.b32.xlu1 %v1717_v13, %s1473_s1 }
 0xd4f   :  { %622 = vrot.lane.b32.xlu1 %v1757_v9, %s1473_s1 }
 0xd53   :  { %959 = vrot.lane.b32.xlu1 %v957_v23, %s1473_s1 }
 0xdb9   :  { %v966_v29 = vpop.permute.xlu1 %965 }
 0xdba   :  { %1201 = vmatmul.mubr.msk.f32.vlgmr.msra.gmra.mrb[10].mxu0 %vm188_vm9, %v966_v29 }
 0xdbd   :  { %v399_v35 = vpop.permute.xlu1 %398 }
 0xdbe   :  { %402 = vst.msk [vmem:[#allocation2] sm:$0xc] %vm401_vm10, %v399_v35 }
 0xdbf   :  { %404 = vst.msk [vmem:[#allocation2 + $0xa] sm:$0xc] %vm403_vm11, %v399_v35 }
 0xdc1   :  { %v623_v37 = vpop.permute.xlu1 %622 }
 0xdc2   :  { %626 = vst.msk [vmem:[#allocation2] sm:$0xc0] %vm625_vm12, %v623_v37 }
 0xdc3   :  { %628 = vst.msk [vmem:[#allocation2 + $0x2] sm:$0xc0] %vm627_vm13, %v623_v37 }
 0xdc4   :  { %739 = vst.msk [vmem:[#allocation2 + $0x8] sm:$0x3] %vm286_vm7, %v1777_v50 }
 0xdc5   :  { %740 = vst.msk [vmem:[#allocation2 + $0x6] sm:$0x3] %vm288_vm8, %v1777_v50  ;;  %v960_v13 = vpop.permute.xlu1 %959 }
 0xdc6   :  { %962 = vst.msk [vmem:[#allocation2 + $0x8] sm:$0x30] %vm513_vm14, %v960_v13 }
 0xdc7   :  { %963 = vst.msk [vmem:[#allocation2 - $0x2] sm:$0x30] %vm515_vm15, %v960_v13 }
 0xe8d   :  { %v1035_v9 = vpop.f32.mrb[10].mxu0 }
 0xe8e   :  { %v1042_v38 = vrot.slane %v1035_v9, 2  ;;  %v1037_v39 = vpop.f32.mrb[11].mxu0 }
 0xe8f   :  { %v1043_v40 = vrot.slane %v1037_v39, 2 }
 0xe90   :  { %v1046_v44 = vadd.f32 %v1042_v38, %v1660_v20  ;;  %v1074_v20 = vld [vmem:[%s1883_s2] sm:$0xff] }
 0xe91   :  { %v1047_v45 = vadd.f32 %v1043_v40, %v1668_v25  ;;  %v1075_v25 = vld [vmem:[%s1883_s2 + $0x8] sm:$0xff] }
 0xe92   :  { %v1048_v46 = vmul.f32 0.5, %v1046_v44  ;;  %v1374_v30 = vpack.c.bf16 %v1075_v25, %v1074_v20 }
 0xe93   :  { %v1049_v48 = vmul.f32 %v1047_v45, %v1680_v31 }
 0xe94   :  { %1440 = vtanh.f32 %v1048_v46  ;;  %1375 = vmatprep.subr.bf16.mxu1 %v1374_v30 }
 0xe95   :  { %1442 = vtanh.f32 %v1049_v48  ;;  %1377 = vmatpush3.bf16.msra.mxu1 %v1374_v30 }
 0xe9e   :  { %v1441_v49 = vpop.eup %1440 }
 0xe9f   :  { %v1443_v50 = vpop.eup %1442  ;;  %v1052_v26 = vmul.f32 0.5, %v1441_v49 }
 0xea0   :  { %v1053_v33 = vmul.f32 %v1443_v50, %v1680_v31  ;;  %v1076_v31 = vld [vmem:[%s1883_s2 + $0x10] sm:$0xff] }
 0xea1   :  { %v1054_v53 = vadd.f32 0.5, %v1052_v26 }
 0xea2   :  { %v1055_v22 = vadd.f32 %v1053_v33, %v1693_v41  ;;  %v1077_v41 = vld [vmem:[%s1883_s2 + $0x18] sm:$0xff] }
 0xea3   :  { %v1059_v7 = vmul.f32 %v1057_v51, %v1054_v53  ;;  %v1378_v32 = vpack.c.bf16 %v1077_v41, %v1076_v31 }
 0xea4   :  { %v1060_v54 = vmul.f32 %v1055_v22, %v1054_v53 }
 0xea5   :  { %1379 = vmatprep.subr.bf16.mxu1 %v1378_v32 }
 0xea6   :  { %1062 = vrot.lane.b32.xlu0 %v1060_v54, %s1473_s1  ;;  %1381 = vmatpush3.bf16.msra.mxu1 %v1378_v32 }
 0xea7   :  { %1383 = vmatprep.subr.bf16.mxu1 %v1382_v47 }
 0xeaa   :  { %510 = vrot.lane.b32.xlu0 %v1737_v52, %s1473_s1  ;;  %v1080_v52 = vld [vmem:[%s1883_s2 + $0x30] sm:$0xff]  ;;  %1385 = vmatpush3.bf16.msra.mxu1 %v1382_v47 }
 0xeab   :  { %v1386_v58 = vpack.c.bf16 %v1081_v56, %v1080_v52 }
 0xead   :  { %1387 = vmatprep.subr.bf16.mxu1 %v1386_v58 }
 0xeae   :  { %849 = vrot.lane.b32.xlu0 %v1795_v62, %s1473_s1  ;;  %1389 = vmatpush3.bf16.msra.mxu1 %v1386_v58 }
 0xf18   :  { %v1063_v36 = vpop.permute.xlu0 %1062 }
 0xf19   :  { %v1065_v42 = vadd.f32 %v1063_v36, %v1059_v7 }
 0xf1b   :  { %1444 = vtanh.f32 %v1065_v42 }
 0xf1c   :  { %v511_v57 = vpop.permute.xlu0 %510 }
 0xf1d   :  { %514 = vst.msk [vmem:[#allocation2] sm:$0x30] %vm513_vm14, %v511_v57 }
 0xf1e   :  { %516 = vst.msk [vmem:[#allocation2 + $0x6] sm:$0x30] %vm515_vm15, %v511_v57 }
 0xf20   :  { %v850_v59 = vpop.permute.xlu0 %849 }
 0xf21   :  { %852 = vst.msk [vmem:[#allocation2 + $0x8] sm:$0xc] %vm401_vm10, %v850_v59 }
 0xf22   :  { %853 = vst.msk [vmem:[#allocation2 + $0x2] sm:$0xc] %vm403_vm11, %v850_v59 }
 0xf25   :  { %v1445_v60 = vpop.eup %1444 }
 0xf26   :  { %v1067_v61 = vmul.f32 %v1445_v60, %v1055_v22 }
 0xf28   :  { %1069 = vrot.lane.b32.xlu0 %v1067_v61, %s1473_s1 }
 0xf9a   :  { %v1070_v62 = vpop.permute.xlu0 %1069 }
 0xf9b   :  { %1072 = vst.msk [vmem:[#allocation2 + $0x8] sm:$0xc0] %vm625_vm12, %v1070_v62 }
 0xf9c   :  { %1073 = vst.msk [vmem:[#allocation2 - $0x6] sm:$0xc0] %vm627_vm13, %v1070_v62 }
 0xfa2   :  { %v1084_v0 = vld [vmem:[#allocation2 + $0x8] sm:$0xff] }
 0xfa3   :  { %v1083_v63 = vld [vmem:[#allocation2] sm:$0xff] }
 0xfa4   :  { %1231 = vmatprep.mubr.msk.f32.mxu1 %vm188_vm9, %v1083_v63 }
 0xfa5   :  { %1232 = vmatmul.mubr.msk.f32.vlgmr.msra.gmra.mrb[8].mxu1 %vm188_vm9, %v1084_v0 }
0x1078   :  { %v1233_v2 = vpop.f32.mrb[8].mxu1 }
0x1079   :  { %v1167_v3 = vadd.f32 %v1233_v2, %v1202_v1  ;;  %v1161_v17 = vpop.f32.mrb[9].mxu1 }
0x107a   :  { %v1162_v4 = vadd.f32 %v1202_v1, %v1161_v17 }
0x107b   :  { %1171 = vst [vmem:[#allocation3 + $0x8] sm:$0xff] %v1167_v3 }
0x107c   :  { %1170 = vst [vmem:[#allocation3] sm:$0xff] %v1162_v4 }
0x107d   :  { %1457 = shalt.err (!%p1454_p4)
}
0x107e   :  { %s1458_s2 = scalar_lea.hbm %s1884_s3, 256 }
0x107f   :  { %p1459_p5 = scmp.ne.s32.totalorder %s1884_s3, %s1458_s2  ;;  %p1462_p6 = scmp.lt.u32.totalorder %s1458_s2, %s1884_s3 }
0x1081   :  { %p1464_p7 = pnand %p1462_p6, %p1459_p5 }
0x1083   :  { %1467 = shalt.err (!%p1464_p7)
}
0x1084   :  { %s1475_s21 = smov 128   ;;  %s1476_s1 = smov 8  }
0x1085   :  { %1183 = dma.vmem_to_hbm [thread:$0]  %s1178_s13, 256, %s1884_s3, [#allocation4], %s1475_s21, %s1475_s21, %s1476_s1  }
0x1086   :  { %1468 = dma.done.wait [#allocation4], 256  }
0x1087   :  { %1469 = vsyncadd [#allocation4], 4294967040 }
0x1088   :  { %1187 = vsyncpa [#allocation4], 1 }

</bundles_post_ra>
